<compile_context>
chip_gen: v5e
topology: v5e:2x2
jax: 0.10.0
libtpu: 0.0.40
codegen_flags: <defaults>
</compile_context>

<pallas_src>
import numpy as np
import jax
import jax.numpy as jnp
from jax import lax
from jax.experimental import pallas as pl
from jax.experimental.pallas import tpu as pltpu


# ---------------------------------------------------------------------------
# Helpers
# ---------------------------------------------------------------------------
def _vmem_limit_bytes() -> int:
    """Generation-aware VMEM budget: ~85% of physical, 64 MiB fallback."""
    cap = 64 * 1024 * 1024
    try:
        info = pltpu.get_tpu_info()
        cap = int(getattr(info, "vmem_capacity_bytes", cap) or cap)
    except Exception:
        pass
    return int(0.85 * cap)


def _pick_tile(n, candidates):
    """Largest candidate tile that divides n, else the full dim."""
    for c in candidates:
        if c <= n and n % c == 0:
            return c
    return n


def _kernel_product(r):
    """(K_0.5 + K_1.0) * (K_1.5 + K_2.0) from a single exp.

    With r = exp(-d2 / (12 * mean_d2)):
      K_0.5 = r^12, K_1.0 = r^6, K_1.5 = r^4, K_2.0 = r^3
    so one EUP transcendental per element; the integer powers are 5 VPU
    multiplies (VALU has slack, EUP was the saturating slot).
    """
    r2 = r * r
    r3 = r2 * r
    r4 = r2 * r2
    r6 = r3 * r3
    r12 = r6 * r6
    return (r12 + r6) * (r4 + r3)


def _linear_tile_sum(xs, xsn, xt, xtn, c):
    """Row-sum of the 4 signed kernel terms of the linear estimator."""
    def d2(a, b):
        diff = a - b
        return jnp.sum(diff * diff, axis=1, keepdims=True)   # [rows, 1]

    # Pack the four d2 columns into one [rows, 4] array (broadcasting selects,
    # no lane concat) so the single exp runs on 4x denser vregs.
    col = lax.broadcasted_iota(jnp.int32, (1, 4), 1)
    d2_all = (jnp.where(col == 0, d2(xs, xsn), 0.0)     # km[s1, s2]
              + jnp.where(col == 1, d2(xt, xtn), 0.0)   # km[t1, t2]
              + jnp.where(col == 2, d2(xs, xtn), 0.0)   # km[s1, t2]
              + jnp.where(col == 3, d2(xsn, xt), 0.0))  # km[s2, t1]
    kp = _kernel_product(jnp.exp(d2_all * c))
    sign = jnp.where(col < 2, 1.0, -1.0)                # + + - -
    return jnp.sum(kp * sign)


# ---------------------------------------------------------------------------
# Linear estimator (B >= 3): only 4*B index-matrix entries are non-zero, so we
# never materialize anything N^2 -- O(B*D) work.
# ---------------------------------------------------------------------------
def _linear_kernel_single(scale_ref, xs_ref, xt_ref, o_ref):
    """Single-shot: whole z_s / z_t in VMEM, (i+1)%B neighbours rolled in-kernel."""
    xs = xs_ref[...]
    xt = xt_ref[...]
    xsn = jnp.roll(xs, -1, axis=0)       # row i -> row (i+1) % B  (sublane roll)
    xtn = jnp.roll(xt, -1, axis=0)
    total = _linear_tile_sum(xs, xsn, xt, xtn, scale_ref[0])
    o_ref[...] = total.reshape(1, 1)


def _linear_kernel_tiled(scale_ref, xs_ref, xsn_ref, xt_ref, xtn_ref, o_ref,
                         acc_ref):
    """Fallback for very large B*D: tiled over B, neighbours pre-rolled by XLA."""
    i = pl.program_id(0)

    @pl.when(i == 0)
    def _():
        acc_ref[...] = jnp.zeros_like(acc_ref)

    acc_ref[...] += _linear_tile_sum(xs_ref[...], xsn_ref[...], xt_ref[...],
                                     xtn_ref[...], scale_ref[0])

    @pl.when(i == pl.num_programs(0) - 1)
    def _():
        o_ref[...] = acc_ref[...]


# ---------------------------------------------------------------------------
# Dense path: tiled [N, N] kernel matrix.  Used for linear=False and the tiny
# batch (B <= 2) linear fallback.  Emits lane-dense per-row-tile partial sums
# so the row-tile axis can be megacore-"parallel" and the final cross-lane
# reduce happens once in the wrapper.
# ---------------------------------------------------------------------------
def _make_dense_kernel(batch_size, tm, tn, linear, per_tile_weight):
    if linear:
        w_pos = 1.0 / float(batch_size)
        w_neg = -1.0 / float(batch_size)
    else:
        w_same = (1.0 / float(batch_size * (batch_size - 1))
                  if batch_size > 1 else 0.0)
        w_cross = -1.0 / float(batch_size * batch_size)
    nbr = batch_size // tm if per_tile_weight else 0
    nbc = batch_size // tn if per_tile_weight else 0

    def index_weights(i, j):
        rows = i * tm + lax.broadcasted_iota(jnp.int32, (tm, tn), 0)
        cols = j * tn + lax.broadcasted_iota(jnp.int32, (tm, tn), 1)
        rd = rows >= batch_size                 # row in target domain?
        cd = cols >= batch_size                 # col in target domain?
        rr = rows - jnp.where(rd, batch_size, 0)
        cc = cols - jnp.where(cd, batch_size, 0)
        if linear:
            succ_r = jnp.where(rr + 1 == batch_size, 0, rr + 1)   # (rr+1) % B
            succ_c = jnp.where(cc + 1 == batch_size, 0, cc + 1)   # (cc+1) % B
            same = jnp.where((rd == cd) & (cc == succ_r), w_pos, 0.0)
            cross = jnp.where((~rd) & cd & ((cc == succ_r) | (rr == succ_c)),
                              w_neg, 0.0)
            return same + cross
        same = jnp.where((rd == cd) & (rr != cc), w_same, 0.0)
        cross = jnp.where(rd != cd, w_cross, 0.0)
        return same + cross

    def kernel(scale_ref, xr_ref, xc_ref, sqr_ref, sqc_ref, o_ref, acc_ref):
        i = pl.program_id(0)
        j = pl.program_id(1)

        @pl.when(j == 0)
        def _():
            acc_ref[...] = jnp.zeros_like(acc_ref)

        c = scale_ref[0]

        # Pairwise squared distances for this (tm, tn) tile via the MXU; the
        # contraction is over the last dim of both operands -> no transpose.
        # TODO(synk): optional bf16 cast of the feature tiles for the gram on
        # v6e/v7x (f32 matmul is emulated); needs a tolerance check first.
        gram = lax.dot_general(xr_ref[...], xc_ref[...],
                               dimension_numbers=(((1,), (1,)), ((), ())),
                               preferred_element_type=jnp.float32)
        d2 = jnp.maximum(sqr_ref[...] + sqc_ref[...] - 2.0 * gram, 0.0)
        km = _kernel_product(jnp.exp(d2 * c))

        if per_tile_weight:
            # Tiles never straddle the source/target boundary -> scalar weight
            # (diagonal over-count corrected analytically in the wrapper).
            w = jnp.where((i >= nbr) == (j >= nbc), w_same, w_cross)
            acc_ref[...] += w * jnp.sum(km, axis=0, keepdims=True)
        else:
            acc_ref[...] += jnp.sum(km * index_weights(i, j), axis=0,
                                    keepdims=True)

        @pl.when(j == pl.num_programs(1) - 1)
        def _():
            o_ref[0] = acc_ref[...]

    return kernel


def _dense_tiles(n, batch_size, d, linear, vmem_budget):
    """Pick (tm, tn, per_tile_weight) under the per-generation VMEM budget."""
    tm_cands = (1024, 512, 256, 128, 64, 32, 16, 8)

    def fits(tm, tn):
        feat = 2 * (tm + tn) * d * 4          # double-buffered f32 feature tiles
        inter = 8 * tm * tn * 4               # gram / d2 / powers / km headroom
        return feat + inter < int(0.75 * vmem_budget)

    # Non-straddling tiles (divide B, not just N=2B): per-tile scalar weight.
    if (not linear) and batch_size % 128 == 0:
        tn = 256 if batch_size % 256 == 0 else 128
        for c in tm_cands:
            if batch_size % c == 0 and fits(c, tn):
                return c, tn, True

    tn = _pick_tile(n, (256, 128))
    for c in tm_cands:
        if n % c == 0 and fits(c, tn):
            return c, tn, False
    # TODO(synk): add a D-chunk grid axis for feature dims too large to fit.
    return n, tn, False


# ---------------------------------------------------------------------------
# Wrapper
# ---------------------------------------------------------------------------
def jmkmmd(z_s: jnp.ndarray, z_t: jnp.ndarray, linear: bool = True) -> jnp.ndarray:
    """JMKMMD loss. z_s, z_t: [B, D]."""
    batch_size = int(z_s.shape[0])
    d = int(z_s.shape[1])
    n = 2 * batch_size

    z_s = z_s.astype(jnp.float32)
    z_t = z_t.astype(jnp.float32)

    vmem_limit = _vmem_limit_bytes()

    # Analytic, numerically stable mean of the N x N squared-distance matrix:
    # distances are translation-invariant, so center first, then
    #   mean(D2) = 2 * sum_i ||x_i - mu||^2 / N   (no cancellation).
    mu = (jnp.sum(z_s, axis=0) + jnp.sum(z_t, axis=0)) / float(n)   # [D]
    zs_c = z_s - mu
    zt_c = z_t - mu
    mean_d2 = 2.0 * (jnp.sum(zs_c * zs_c) + jnp.sum(zt_c * zt_c)) / float(n)

    # Single exponent scale: r = exp(-d2/(12*mean_d2)); K_{.5,1,1.5,2}=r^{12,6,4,3}.
    # TODO(synk): mean_d2 == 0 (all rows identical) yields NaN, same as the
    # PyTorch reference.
    scale = (-1.0 / (12.0 * mean_d2)).reshape(1).astype(jnp.float32)

    # TODO(synk): batch_size == 1 divides by zero, exactly like the reference.
    bias = 2.0 / float(batch_size - 1)

    if linear and batch_size >= 3:
        # Linear estimator: only the 4*B required pairwise distances.
        # (B <= 2 falls through to the masked dense path: the reference's
        # overlapping index-matrix assignments would make the per-pair
        # decomposition double-count the cross terms for B == 2.)
        single_shot_bytes = 4 * batch_size * d * 4     # 2 arrays + 2x margin
        if single_shot_bytes <= vmem_limit // 2:
            out = pl.pallas_call(
                _linear_kernel_single,
                out_shape=jax.ShapeDtypeStruct((1, 1), jnp.float32),
                in_specs=[
                    pl.BlockSpec(memory_space=pltpu.MemorySpace.SMEM),   # scale
                    pl.BlockSpec(memory_space=pltpu.MemorySpace.VMEM),   # z_s
                    pl.BlockSpec(memory_space=pltpu.MemorySpace.VMEM),   # z_t
                ],
                out_specs=pl.BlockSpec(memory_space=pltpu.MemorySpace.VMEM),
                compiler_params=pltpu.CompilerParams(
                    vmem_limit_bytes=vmem_limit),
            )(scale, z_s, z_t)
        else:
            # Very large B*D fallback: tile over B, neighbours pre-rolled.
            xsn = jnp.roll(z_s, -1, axis=0)     # z_s[(i+1) % B]
            xtn = jnp.roll(z_t, -1, axis=0)     # z_t[(i+1) % B]
            tb_cands = [c for c in (1024, 512, 256, 128, 64, 32, 16, 8)
                        if batch_size % c == 0 and 32 * c * d <= vmem_limit // 2]
            tb = tb_cands[0] if tb_cands else _pick_tile(batch_size,
                                                         (64, 32, 16, 8))
            feat_spec = pl.BlockSpec((tb, d), lambda i: (i, 0))
            out = pl.pallas_call(
                _linear_kernel_tiled,
                out_shape=jax.ShapeDtypeStruct((1, 1), jnp.float32),
                grid=(batch_size // tb,),
                in_specs=[
                    pl.BlockSpec(memory_space=pltpu.MemorySpace.SMEM),   # scale
                    feat_spec, feat_spec, feat_spec, feat_spec,
                ],
                out_specs=pl.BlockSpec((1, 1), lambda i: (0, 0)),
                scratch_shapes=[pltpu.VMEM((1, 1), jnp.float32)],
                compiler_params=pltpu.CompilerParams(
                    dimension_semantics=("arbitrary",),
                    vmem_limit_bytes=vmem_limit),
            )(scale, z_s, xsn, z_t, xtn)
        return out[0, 0] * (1.0 / float(batch_size)) + bias

    # Dense path: 2-D tiled grid over the [N, N] kernel matrix.  Features are
    # centered (distances unchanged, d2 = |r|^2+|c|^2-2<r,c> better conditioned).
    features = jnp.concatenate([zs_c, zt_c], axis=0)                  # [N, D]
    sqn = jnp.sum(features * features, axis=1)                        # [N]

    tm, tn, per_tile = _dense_tiles(n, batch_size, d, linear, vmem_limit)
    kernel = _make_dense_kernel(batch_size, tm, tn, linear, per_tile)
    num_row_tiles = n // tm

    # TODO(synk): sweep pipeline_mode=pl.Buffered(3) on the column-feature
    # BlockSpec for small D where the (tn, d) DMA is exposed.
    partials = pl.pallas_call(
        kernel,
        out_shape=jax.ShapeDtypeStruct((num_row_tiles, 1, tn), jnp.float32),
        grid=(num_row_tiles, n // tn),
        in_specs=[
            pl.BlockSpec(memory_space=pltpu.MemorySpace.SMEM),        # scale
            pl.BlockSpec((tm, d), lambda i, j: (i, 0)),               # row feats
            pl.BlockSpec((tn, d), lambda i, j: (j, 0)),               # col feats
            pl.BlockSpec((tm, 1), lambda i, j: (i, 0)),               # row ||x||^2
            pl.BlockSpec((1, tn), lambda i, j: (0, j)),               # col ||x||^2
        ],
        out_specs=pl.BlockSpec((1, 1, tn), lambda i, j: (i, 0, 0)),
        scratch_shapes=[pltpu.VMEM((1, tn), jnp.float32)],
        compiler_params=pltpu.CompilerParams(
            dimension_semantics=("parallel", "arbitrary"),
            vmem_limit_bytes=vmem_limit),
    )(scale, features, features, sqn.reshape(n, 1), sqn.reshape(1, n))

    total = jnp.sum(partials)
    if per_tile:
        # Per-tile uniform weights counted the diagonal (km == 4 exactly in
        # the reference) with w_same: subtract 2B * 4 / (B*(B-1)) analytically.
        total = total - 8.0 / float(batch_size - 1)
    return total + bias


# ---------------------------------------------------------------------------
# Pure-JAX reference (mirrors the PyTorch module) for correctness checks.
# ---------------------------------------------------------------------------
def _make_index_matrix(batch_size: int, linear: bool = True) -> jnp.ndarray:
    m = np.zeros((2 * batch_size, 2 * batch_size), dtype=np.float32)
    if linear:
        for i in range(batch_size):
            s1, s2 = i, (i + 1) % batch_size
            t1, t2 = s1 + batch_size, s2 + batch_size
            m[s1, s2] = 1.0 / float(batch_size)
            m[t1, t2] = 1.0 / float(batch_size)
            m[s1, t2] = -1.0 / float(batch_size)
            m[s2, t1] = -1.0 / float(batch_size)
    else:
        for i in range(batch_size):
            for j in range(batch_size):
                if i != j:
                    m[i, j] = 1.0 / float(batch_size * (batch_size - 1))
                    m[i + batch_size, j + batch_size] = 1.0 / float(
                        batch_size * (batch_size - 1))
        for i in range(batch_size):
            for j in range(batch_size):
                m[i, j + batch_size] = -1.0 / float(batch_size * batch_size)
                m[i + batch_size, j] = -1.0 / float(batch_size * batch_size)
    return jnp.asarray(m)


def _reference(z_s, z_t, linear=True):
    batch_size = int(z_s.shape[0])
    x = jnp.concatenate([z_s, z_t], axis=0).astype(jnp.float32)
    d2 = jnp.sum((x[None, :, :] - x[:, None, :]) ** 2, axis=2)
    mean_d2 = jnp.mean(d2)

    def gauss(alpha):
        return jnp.exp(-d2 / (2.0 * alpha * mean_d2))

    km = (gauss(0.5) + gauss(1.0)) * (gauss(1.5) + gauss(2.0))
    idx = _make_index_matrix(batch_size, linear)
    return jnp.sum(km * idx) + 2.0 / float(batch_size - 1)


if __name__ == "__main__":
    key = jax.random.PRNGKey(0)
    k1, k2, k3, k4 = jax.random.split(key, 4)
    B, D = 4, 32
    z_s = jax.random.normal(k1, (B, D), dtype=jnp.float32)
    z_t = jax.random.normal(k2, (B, D), dtype=jnp.float32) + 0.5

    # Linear estimator (default): O(B*D) single-shot kernel.
    loss_lin = jax.block_until_ready(jmkmmd(z_s, z_t, linear=True))
    ref_lin = jax.block_until_ready(_reference(z_s, z_t, linear=True))
    assert np.allclose(np.asarray(loss_lin), np.asarray(ref_lin),
                       rtol=1e-3, atol=1e-3), (float(loss_lin), float(ref_lin))

    # Non-linear estimator: tiled dense kernel (masked, tiny tiles here).
    loss_nl = jax.block_until_ready(jmkmmd(z_s, z_t, linear=False))
    ref_nl = jax.block_until_ready(_reference(z_s, z_t, linear=False))
    assert np.allclose(np.asarray(loss_nl), np.asarray(ref_nl),
                       rtol=1e-3, atol=1e-3), (float(loss_nl), float(ref_nl))

    # Tiny-batch linear case (B=2) exercises the masked dense fallback.
    z_s2 = jax.random.normal(k3, (2, D), dtype=jnp.float32)
    z_t2 = jax.random.normal(k4, (2, D), dtype=jnp.float32) + 0.25
    loss_l2 = jax.block_until_ready(jmkmmd(z_s2, z_t2, linear=True))
    ref_l2 = jax.block_until_ready(_reference(z_s2, z_t2, linear=True))
    assert np.allclose(np.asarray(loss_l2), np.asarray(ref_l2),
                       rtol=1e-3, atol=1e-3), (float(loss_l2), float(ref_l2))

    print("KERNEL_OK")
</pallas_src>

<mosaic_0001>
module attributes {stable_mosaic.version = 11 : i64} {
  func.func @_linear_kernel_single(%arg0: memref<1xf32, #tpu.memory_space<smem>>, %arg1: memref<4x32xf32, #tpu.memory_space<vmem>>, %arg2: memref<4x32xf32, #tpu.memory_space<vmem>>, %arg3: memref<1x1xf32, #tpu.memory_space<vmem>>) attributes {dimension_semantics = [], scalar_prefetch = 0 : i64, scratch_operands = 0 : i64, tpu.core_type = #tpu.core_type<tc>} {
    %c0 = arith.constant 0 : index
    %c0_0 = arith.constant 0 : index
    %0 = vector.load %arg1[%c0, %c0_0] : memref<4x32xf32, #tpu.memory_space<vmem>>, vector<4x32xf32>
    %c0_1 = arith.constant 0 : index
    %c0_2 = arith.constant 0 : index
    %1 = vector.load %arg2[%c0_1, %c0_2] : memref<4x32xf32, #tpu.memory_space<vmem>>, vector<4x32xf32>
    %2 = vector.extract_strided_slice %0 {offsets = [1, 0], sizes = [3, 32], strides = [1, 1]} : vector<4x32xf32> to vector<3x32xf32>
    %3 = vector.extract_strided_slice %0 {offsets = [0, 0], sizes = [1, 32], strides = [1, 1]} : vector<4x32xf32> to vector<1x32xf32>
    %4 = tpu.concatenate %2, %3 in 0 : vector<3x32xf32>, vector<1x32xf32> -> vector<4x32xf32>
    %5 = vector.extract_strided_slice %1 {offsets = [1, 0], sizes = [3, 32], strides = [1, 1]} : vector<4x32xf32> to vector<3x32xf32>
    %6 = vector.extract_strided_slice %1 {offsets = [0, 0], sizes = [1, 32], strides = [1, 1]} : vector<4x32xf32> to vector<1x32xf32>
    %7 = tpu.concatenate %5, %6 in 0 : vector<3x32xf32>, vector<1x32xf32> -> vector<4x32xf32>
    %c0_3 = arith.constant 0 : index
    %8 = memref.load %arg0[%c0_3] : memref<1xf32, #tpu.memory_space<smem>>
    %9 = tpu.iota {dimensions = array<i32: 1>} : vector<1x4xi32>
    %c0_i32 = arith.constant 0 : i32
    %10 = vector.broadcast %c0_i32 : i32 to vector<1x4xi32>
    %11 = arith.cmpi eq, %9, %10 : vector<1x4xi32>
    %12 = arith.subf %0, %4 : vector<4x32xf32>
    %13 = arith.mulf %12, %12 : vector<4x32xf32>
    %cst = arith.constant dense<0.000000e+00> : vector<4xf32>
    %14 = vector.multi_reduction <add>, %13, %cst [1] : vector<4x32xf32> to vector<4xf32>
    %15 = vector.shape_cast %14 : vector<4xf32> to vector<4x1xf32>
    %cst_4 = arith.constant 0.000000e+00 : f32
    %16 = vector.shape_cast %11 : vector<1x4xi1> to vector<1x4xi1>
    %17 = vector.broadcast %16 : vector<1x4xi1> to vector<4x4xi1>
    %18 = vector.shape_cast %15 : vector<4x1xf32> to vector<4x1xf32>
    %19 = vector.broadcast %18 : vector<4x1xf32> to vector<4x4xf32>
    %20 = vector.broadcast %cst_4 : f32 to vector<4x4xf32>
    %21 = arith.select %17, %19, %20 : vector<4x4xi1>, vector<4x4xf32>
    %c1_i32 = arith.constant 1 : i32
    %22 = vector.broadcast %c1_i32 : i32 to vector<1x4xi32>
    %23 = arith.cmpi eq, %9, %22 : vector<1x4xi32>
    %24 = arith.subf %1, %7 : vector<4x32xf32>
    %25 = arith.mulf %24, %24 : vector<4x32xf32>
    %cst_5 = arith.constant dense<0.000000e+00> : vector<4xf32>
    %26 = vector.multi_reduction <add>, %25, %cst_5 [1] : vector<4x32xf32> to vector<4xf32>
    %27 = vector.shape_cast %26 : vector<4xf32> to vector<4x1xf32>
    %cst_6 = arith.constant 0.000000e+00 : f32
    %28 = vector.shape_cast %23 : vector<1x4xi1> to vector<1x4xi1>
    %29 = vector.broadcast %28 : vector<1x4xi1> to vector<4x4xi1>
    %30 = vector.shape_cast %27 : vector<4x1xf32> to vector<4x1xf32>
    %31 = vector.broadcast %30 : vector<4x1xf32> to vector<4x4xf32>
    %32 = vector.broadcast %cst_6 : f32 to vector<4x4xf32>
    %33 = arith.select %29, %31, %32 : vector<4x4xi1>, vector<4x4xf32>
    %34 = arith.addf %21, %33 : vector<4x4xf32>
    %c2_i32 = arith.constant 2 : i32
    %35 = vector.broadcast %c2_i32 : i32 to vector<1x4xi32>
    %36 = arith.cmpi eq, %9, %35 : vector<1x4xi32>
    %37 = arith.subf %0, %7 : vector<4x32xf32>
    %38 = arith.mulf %37, %37 : vector<4x32xf32>
    %cst_7 = arith.constant dense<0.000000e+00> : vector<4xf32>
    %39 = vector.multi_reduction <add>, %38, %cst_7 [1] : vector<4x32xf32> to vector<4xf32>
    %40 = vector.shape_cast %39 : vector<4xf32> to vector<4x1xf32>
    %cst_8 = arith.constant 0.000000e+00 : f32
    %41 = vector.shape_cast %36 : vector<1x4xi1> to vector<1x4xi1>
    %42 = vector.broadcast %41 : vector<1x4xi1> to vector<4x4xi1>
    %43 = vector.shape_cast %40 : vector<4x1xf32> to vector<4x1xf32>
    %44 = vector.broadcast %43 : vector<4x1xf32> to vector<4x4xf32>
    %45 = vector.broadcast %cst_8 : f32 to vector<4x4xf32>
    %46 = arith.select %42, %44, %45 : vector<4x4xi1>, vector<4x4xf32>
    %47 = arith.addf %34, %46 : vector<4x4xf32>
    %c3_i32 = arith.constant 3 : i32
    %48 = vector.broadcast %c3_i32 : i32 to vector<1x4xi32>
    %49 = arith.cmpi eq, %9, %48 : vector<1x4xi32>
    %50 = arith.subf %4, %1 : vector<4x32xf32>
    %51 = arith.mulf %50, %50 : vector<4x32xf32>
    %cst_9 = arith.constant dense<0.000000e+00> : vector<4xf32>
    %52 = vector.multi_reduction <add>, %51, %cst_9 [1] : vector<4x32xf32> to vector<4xf32>
    %53 = vector.shape_cast %52 : vector<4xf32> to vector<4x1xf32>
    %cst_10 = arith.constant 0.000000e+00 : f32
    %54 = vector.shape_cast %49 : vector<1x4xi1> to vector<1x4xi1>
    %55 = vector.broadcast %54 : vector<1x4xi1> to vector<4x4xi1>
    %56 = vector.shape_cast %53 : vector<4x1xf32> to vector<4x1xf32>
    %57 = vector.broadcast %56 : vector<4x1xf32> to vector<4x4xf32>
    %58 = vector.broadcast %cst_10 : f32 to vector<4x4xf32>
    %59 = arith.select %55, %57, %58 : vector<4x4xi1>, vector<4x4xf32>
    %60 = arith.addf %47, %59 : vector<4x4xf32>
    %61 = vector.broadcast %8 : f32 to vector<4x4xf32>
    %62 = arith.mulf %60, %61 : vector<4x4xf32>
    %63 = math.exp %62 : vector<4x4xf32>
    %64 = arith.mulf %63, %63 : vector<4x4xf32>
    %65 = arith.mulf %64, %63 : vector<4x4xf32>
    %66 = arith.mulf %64, %64 : vector<4x4xf32>
    %67 = arith.mulf %65, %65 : vector<4x4xf32>
    %68 = arith.mulf %67, %67 : vector<4x4xf32>
    %69 = arith.addf %68, %67 : vector<4x4xf32>
    %70 = arith.addf %66, %65 : vector<4x4xf32>
    %71 = arith.mulf %69, %70 : vector<4x4xf32>
    %c2_i32_11 = arith.constant 2 : i32
    %72 = vector.broadcast %c2_i32_11 : i32 to vector<1x4xi32>
    %73 = arith.cmpi slt, %9, %72 : vector<1x4xi32>
    %cst_12 = arith.constant 1.000000e+00 : f32
    %cst_13 = arith.constant -1.000000e+00 : f32
    %74 = vector.broadcast %cst_12 : f32 to vector<1x4xf32>
    %75 = vector.broadcast %cst_13 : f32 to vector<1x4xf32>
    %76 = arith.select %73, %74, %75 : vector<1x4xi1>, vector<1x4xf32>
    %77 = vector.broadcast %76 : vector<1x4xf32> to vector<4x4xf32>
    %78 = arith.mulf %71, %77 : vector<4x4xf32>
    %79 = vector.shape_cast %78 : vector<4x4xf32> to vector<1x4x4xf32>
    %cst_14 = arith.constant dense<0.000000e+00> : vector<1xf32>
    %80 = vector.multi_reduction <add>, %79, %cst_14 [1, 2] : vector<1x4x4xf32> to vector<1xf32>
    %81 = vector.shape_cast %80 : vector<1xf32> to vector<1x1x1xf32>
    %82 = vector.extract %81[0, 0, 0] : f32 from vector<1x1x1xf32>
    %83 = vector.broadcast %82 : f32 to vector<1x1xf32>
    %c0_15 = arith.constant 0 : index
    %c0_16 = arith.constant 0 : index
    %84 = vector.load %arg3[%c0_15, %c0_16] : memref<1x1xf32, #tpu.memory_space<vmem>>, vector<1x1xf32>
    tpu.vector_store %arg3[%c0_15, %c0_16], %83 {strides = array<i32>} : memref<1x1xf32, #tpu.memory_space<vmem>>, vector<1x1xf32>,
    return
  }
}

</mosaic_0001>

<bundles_post_ra>
// kernel: tpu_custom_call.1
= control target key start
LH: loop header
LB: loop body
LE: loop exit
PB: predicated region body
PF: predicated region fallthrough
CT: control target
= control target key end

     0   :  { %9 = vsyncpa [#allocation4], 0  ;;  %s271_s0 = inlined_call_operand.<no memory space> [shape: f32[1], index: 0, kind: input, shape index: {}]   ;;  %s272_s1 = inlined_call_operand.hbm [shape: f32[4,32], index: 1, kind: input, shape index: {}]   ;;  %s273_s2 = inlined_call_operand.hbm [shape: f32[4,32], index: 2, kind: input, shape index: {}]   ;;  %s274_s3 = inlined_call_operand.hbm [shape: f32[1,1], index: 3, kind: output, shape index: {}]  }
   0x1   :  { %10 = vsyncpa [#allocation7], 0 }
   0x2   :  { %11 = vsyncpa [#allocation5], 0  ;;  %s19_s14 = sshll.u32 %s272_s1, 4  ;;  %s235_s15 = smov [#allocation3]   ;;  %s20_s14 = int_to_ptr.hbm [resolvable:$true] %s19_s14 }
   0x3   :  { %s21_s16 = sshll.u32 %s235_s15, 4  ;;  %s30_s19 = sshll.u32 %s273_s2, 4  ;;  %s22_s16 = int_to_ptr.vmem [resolvable:$true] %s21_s16  ;;  %s31_s19 = int_to_ptr.hbm [resolvable:$true] %s30_s19 }
   0x4   :  { %24 = dma.hbm_to_vmem [thread:$0]  %s20_s14, 64, %s22_s16, [#allocation4]  }
   0x5   :  { %s236_s20 = smov [#allocation6]  }
   0x6   :  { %s32_s21 = sshll.u32 %s236_s20, 4  ;;  %s33_s21 = int_to_ptr.vmem [resolvable:$true] %s32_s21 }
   0x7   :  { %35 = dma.hbm_to_vmem [thread:$0]  %s31_s19, 64, %s33_s21, [#allocation7]  }
   0x8   :  { %229 = dma.done.wait [#allocation4], 64  }
   0x9   :  { %230 = vsyncadd [#allocation4], 4294967232 }
   0xa   :  { %231 = dma.done.wait [#allocation7], 64  }
   0xb   :  { %232 = vsyncadd [#allocation7], 4294967232  ;;  %v44_v0 = vld [vmem:[#allocation3] sm:$0xf]  ;;  %vm51_vm0 = vcmask 1042432   ;;  %vm65_vm1 = vcmask 257024   ;;  %v60_v20 = vlaneseq  ;;  %v102_v32 = vstv %s271_s0 }
   0xc   :  { %v45_v1 = vld [vmem:[#allocation6] sm:$0xf]  ;;  %v47_v2 = vrot.slane %v44_v0, 1  ;;  %v49_v3 = vrot.slane %v44_v0, 5  ;;  %v237_v44 = vmov -1.0   ;;  %vm117_vm7 = vcmask 27648  }
   0xd   :  { %v54_v4 = vrot.slane %v45_v1, 1  ;;  %v56_v5 = vrot.slane %v45_v1, 5  ;;  %v61_v23 = vand.u32 127, %v60_v20  ;;  %s238_s0 = smov [#allocation8]   ;;  %s138_s25 = sshll.u32 %s274_s3, 4  ;;  %vm129_vm8 = vcmask 0   ;;  %s139_s25 = int_to_ptr.hbm [resolvable:$true] %s138_s25 }
   0xe   :  { %v52_v6 = vsel %vm51_vm0, %v47_v2, %v49_v3  ;;  %s136_s22 = sshll.u32 %s238_s0, 4  ;;  %s137_s22 = int_to_ptr.vmem [resolvable:$true] %s136_s22 }
   0xf   :  { %v58_v7 = vsel %vm51_vm0, %v54_v4, %v56_v5  ;;  %v63_v8 = vsub.f32 %v44_v0, %v52_v6  ;;  %v93_v13 = vsub.f32 %v52_v6, %v45_v1  ;;  %vm62_vm2 = vcmp.eq.s32.totalorder %v61_v23, 0 }
  0x10   :  { %v83_v9 = vsub.f32 %v44_v0, %v58_v7  ;;  %v73_v12 = vsub.f32 %v45_v1, %v58_v7  ;;  %vm72_vm3 = vcmp.eq.s32.totalorder %v61_v23, 1  ;;  %vm82_vm4 = vcmp.eq.s32.totalorder %v61_v23, 2 }
  0x11   :  { %v64_v10 = vmul.f32 %v63_v8, %v63_v8  ;;  %v94_v17 = vmul.f32 %v93_v13, %v93_v13  ;;  %vm92_vm5 = vcmp.eq.s32.totalorder %v61_v23, 3  ;;  %vm114_vm6 = vcmp.lt.s32.totalorder %v61_v23, 2 }
  0x12   :  { %v84_v11 = vmul.f32 %v83_v9, %v83_v9  ;;  %v74_v16 = vmul.f32 %v73_v12, %v73_v12  ;;  %v115_v45 = vsel %vm114_vm6, 1.0, %v237_v44 }
  0x13   :  { %v66_v14 = vsel %vm65_vm1, %v64_v10, 0.0  ;;  %v95_v19 = vsel %vm65_vm1, %v94_v17, 0.0 }
  0x14   :  { %v85_v15 = vsel %vm65_vm1, %v84_v11, 0.0  ;;  %67 = vadd.xlane.f32.xlu0 %v66_v14  ;;  %v75_v18 = vsel %vm65_vm1, %v74_v16, 0.0 }
  0x15   :  { %86 = vadd.xlane.f32.xlu1 %v85_v15 }
  0x1c   :  { %76 = vadd.xlane.f32.xlu0 %v75_v18 }
  0x1d   :  { %96 = vadd.xlane.f32.xlu1 %v95_v19 }
  0x87   :  { %v68_v21 = vpop.xlane.xlu0 %67 }
  0x88   :  { %v87_v22 = vpop.xlane.xlu1 %86  ;;  %v71_v26 = vsel %vm62_vm2, %v68_v21, 0.0 }
  0x89   :  { %v90_v29 = vsel %vm82_vm4, %v87_v22, 0.0 }
  0x8f   :  { %v77_v24 = vpop.xlane.xlu0 %76 }
  0x90   :  { %v97_v25 = vpop.xlane.xlu1 %96  ;;  %v80_v27 = vsel %vm72_vm3, %v77_v24, 0.0 }
  0x91   :  { %v81_v28 = vadd.f32 %v80_v27, %v71_v26  ;;  %v100_v30 = vsel %vm92_vm5, %v97_v25, 0.0 }
  0x93   :  { %v91_v31 = vadd.f32 %v90_v29, %v81_v28 }
  0x95   :  { %v101_v33 = vadd.f32 %v100_v30, %v91_v31 }
  0x97   :  { %v103_v34 = vmul.f32 %v102_v32, %v101_v33 }
  0x99   :  { %v104_v35 = vmul.f32 1.442695, %v103_v34 }
  0x9b   :  { %155 = vpow2.f32 %v104_v35 }
  0xa1   :  { %v156_v36 = vpop.eup %155 }
  0xa2   :  { %v106_v37 = vmul.f32 %v156_v36, %v156_v36 }
  0xa4   :  { %v107_v38 = vmul.f32 %v156_v36, %v106_v37  ;;  %v108_v39 = vmul.f32 %v106_v37, %v106_v37 }
  0xa6   :  { %v109_v40 = vmul.f32 %v107_v38, %v107_v38  ;;  %v112_v43 = vadd.f32 %v108_v39, %v107_v38 }
  0xa8   :  { %v110_v41 = vmul.f32 %v109_v40, %v109_v40 }
  0xaa   :  { %v111_v42 = vadd.f32 %v110_v41, %v109_v40 }
  0xac   :  { %v113_v46 = vmul.f32 %v112_v43, %v111_v42 }
  0xae   :  { %v116_v47 = vmul.f32 %v115_v45, %v113_v46 }
  0xb0   :  { %v118_v48 = vsel %vm117_vm7, %v116_v47, 0.0 }
  0xb1   :  { %119 = vadd.xlane.f32.xlu2 %v118_v48 }
 0x124   :  { %v120_v49 = vpop.xlane.xlu2 %119 }
 0x125   :  { %v121_v50 = vrot.slane %v120_v49, 4 }
 0x127   :  { %v122_v51 = vadd.f32 %v121_v50, %v120_v49 }
 0x129   :  { %v123_v52 = vrot.slane %v122_v51, 2 }
 0x12b   :  { %v124_v53 = vadd.f32 %v123_v52, %v122_v51 }
 0x12d   :  { %v125_v54 = vrot.slane %v124_v53, 1 }
 0x12f   :  { %v126_v55 = vadd.f32 %v125_v54, %v124_v53 }
 0x131   :  { %149 = vpush %v126_v55 }
 0x162   :  { %s150_s26 = spop %149 }
 0x163   :  { %v128_v56 = vstv %s150_s26 }
 0x164   :  { %130 = vst.msk [vmem:[#allocation8] sm:$0x1] %vm129_vm8, %v128_v56 }
 0x165   :  { %141 = dma.vmem_to_hbm [thread:$0]  %s137_s22, 16, %s139_s25, [#allocation5]  }
 0x166   :  { %233 = dma.done.wait [#allocation5], 16  }
 0x167   :  { %234 = vsyncadd [#allocation5], 4294967280 }
 0x168   :  { %146 = vsyncpa [#allocation4], 1 }
 0x169   :  { %147 = vsyncpa [#allocation7], 1 }
 0x16a   :  { %148 = vsyncpa [#allocation5], 1 }

</bundles_post_ra>
